<compile_context>
chip_gen: v5e
topology: v5e:2x2
jax: 0.10.0
libtpu: 0.0.40
codegen_flags: <defaults>
</compile_context>

<pallas_src>
import functools
import math

import jax
import jax.numpy as jnp
from jax.experimental import pallas as pl
from jax.experimental.pallas import tpu as pltpu


def _round_up(x, m):
    return ((x + m - 1) // m) * m


# Keep the whole weight resident in one K step if it is at most this big (bf16).
_SINGLE_STEP_WEIGHT_BYTES = 4 << 20


def _kn_tiling(in_dim, classes):
    """Padded (K, N) sizes + tile sizes for the pre-transposed weight."""
    tn = min(512, _round_up(classes, 128))
    Np = _round_up(classes, tn)
    Kp128 = _round_up(in_dim, 128)
    if Kp128 * Np * 2 <= _SINGLE_STEP_WEIGHT_BYTES:
        # Whole weight fits comfortably: single reduction step, no pipeline
        # warm-up / per-step overhead on the K axis.
        tk, Kp = Kp128, Kp128
    else:
        # Large weight tiles (>= ~0.5 MiB bf16) so HBM streaming, not the
        # ~0.35 us per-grid-step overhead, is the cost.
        tk = min(2048, Kp128)
        Kp = _round_up(in_dim, tk)
    return Kp, Np, tk, tn


def _m_tiling(batch):
    """Batch tiling: multiples of 16 (bf16 sublane packing), tm <= 256."""
    tm = min(256, _round_up(batch, 16))
    Mp = _round_up(batch, tm)
    return Mp, tm


def _linear_kernel(x_ref, w_ref, b_ref, o_ref):
    # Grid = (M tiles, N tiles, K tiles); K is the trailing "arbitrary"
    # reduction axis.  The output block index is invariant in k, so the f32
    # output block stays resident in VMEM and acts as the accumulator.
    k = pl.program_id(2)
    acc = jnp.dot(x_ref[...], w_ref[...], preferred_element_type=jnp.float32)

    @pl.when(k == 0)
    def _():
        o_ref[...] = acc + b_ref[...]          # bias folded into first step

    @pl.when(k > 0)
    def _():
        o_ref[...] += acc


def prepare_classifier_params(weight, bias):
    """One-time parameter prep: transpose + pad + cast weight to bf16.

    weight: [classes, in_dim], bias: [classes]  (PyTorch nn.Linear layout)
    returns w_p: [Kp, Np] bf16, b_p: [1, Np] f32
    """
    classes, in_dim = weight.shape
    Kp, Np, _, _ = _kn_tiling(in_dim, classes)
    w_p = jnp.zeros((Kp, Np), jnp.bfloat16).at[:in_dim, :classes].set(
        weight.T.astype(jnp.bfloat16)
    )
    b_p = jnp.zeros((1, Np), jnp.float32).at[0, :classes].set(
        bias.astype(jnp.float32)
    )
    return w_p, b_p


@functools.partial(jax.jit, static_argnames=("in_dim", "classes"))
def classifier_forward(feature, w_p, b_p, *, in_dim, classes):
    """feature: [B, ...]; w_p/b_p from prepare_classifier_params."""
    B = feature.shape[0]
    x = feature.reshape(B, -1)                 # Flatten (plain JAX glue)
    assert x.shape[1] == in_dim

    Kp, Np, tk, tn = _kn_tiling(in_dim, classes)
    assert w_p.shape == (Kp, Np) and b_p.shape == (1, Np)
    Mp, tm = _m_tiling(B)

    # Pad only the remainder, in bf16 (no full f32 re-materialization).
    x_p = jnp.pad(x.astype(jnp.bfloat16), ((0, Mp - B), (0, Kp - in_dim)))

    m_tiles, n_tiles, k_tiles = Mp // tm, Np // tn, Kp // tk

    # Advisory cost for XLA's scheduler around the custom call.
    cost = pl.CostEstimate(
        flops=2 * B * in_dim * classes,
        transcendentals=0,
        bytes_accessed=(Mp * Kp * 2 + Kp * Np * 2 + Np * 4 + Mp * Np * 4),
    )

    # VMEM budget from the actual tiles: double-buffered bf16 x/w tiles,
    # double-buffered bias, resident f32 output block, plus slack.  Capped at
    # 48 MiB so it stays safe on v7x (64 MiB VMEM) as well as v5e/v6e.
    per_step_bytes = (
        2 * (tm * tk + tk * tn) * 2   # x + w tiles, bf16, double-buffered
        + 2 * tn * 4                  # bias tile, f32, double-buffered
        + 2 * tm * tn * 4             # output block (+ headroom)
    )
    vmem_bytes = int(min(per_step_bytes + (6 << 20), 48 << 20))

    out_p = pl.pallas_call(
        _linear_kernel,
        out_shape=jax.ShapeDtypeStruct((Mp, Np), jnp.float32),
        grid=(m_tiles, n_tiles, k_tiles),
        in_specs=[
            pl.BlockSpec((tm, tk), lambda m, n, k: (m, k)),   # activation tile
            pl.BlockSpec((tk, tn), lambda m, n, k: (k, n)),   # weight tile (pre-T, bf16)
            pl.BlockSpec((1, tn), lambda m, n, k: (0, n)),    # bias tile
        ],
        out_specs=pl.BlockSpec((tm, tn), lambda m, n, k: (m, n)),
        compiler_params=pltpu.CompilerParams(
            dimension_semantics=("parallel", "parallel", "arbitrary"),
            vmem_limit_bytes=vmem_bytes,
        ),
        cost_estimate=cost,
    )(x_p, w_p, b_p)

    return out_p[:B, :classes]


def init_classifier_params(key, in_dim, classes=65):
    # Mimic nn.Linear default init: U(-1/sqrt(in_dim), 1/sqrt(in_dim))
    kw, kb = jax.random.split(key)
    bound = 1.0 / math.sqrt(in_dim)
    weight = jax.random.uniform(kw, (classes, in_dim), jnp.float32, -bound, bound)
    bias = jax.random.uniform(kb, (classes,), jnp.float32, -bound, bound)
    return weight, bias


if __name__ == "__main__":
    key = jax.random.PRNGKey(0)
    k_x, k_p = jax.random.split(key)

    # Small shapes: batch=2, channels=4, spatial=16 -> in_dim = 4*16*16 = 1024.
    B, C, H, W = 2, 4, 16, 16
    in_dim = C * H * W
    classes = 65

    feature = jax.random.normal(k_x, (B, C, H, W), jnp.float32)
    weight, bias = init_classifier_params(k_p, in_dim, classes)

    # One-time parameter preparation (pre-transpose + pad + bf16 cast).
    w_p, b_p = prepare_classifier_params(weight, bias)

    out = classifier_forward(feature, w_p, b_p, in_dim=in_dim, classes=classes)
    out = jax.block_until_ready(out)

    # Sanity check against plain-JAX f32 reference (tolerance accounts for the
    # bf16 weight/activation streaming with f32 accumulation).
    ref = feature.reshape(B, -1) @ weight.T + bias
    assert out.shape == (B, classes)
    assert jnp.allclose(out, ref, atol=2e-2, rtol=2e-2), (
        float(jnp.max(jnp.abs(out - ref)))
    )

    print("KERNEL_OK")
</pallas_src>

<mosaic_0001>
module attributes {stable_mosaic.version = 11 : i64} {
  func.func @_linear_kernel(%arg0: i32, %arg1: i32, %arg2: i32, %arg3: memref<16x1024xbf16, #tpu.memory_space<vmem>>, %arg4: memref<1024x128xbf16, #tpu.memory_space<vmem>>, %arg5: memref<1x128xf32, #tpu.memory_space<vmem>>, %arg6: memref<16x128xf32, #tpu.memory_space<vmem>>) attributes {dimension_semantics = [#tpu.dimension_semantics<parallel>, #tpu.dimension_semantics<parallel>, #tpu.dimension_semantics<arbitrary>], iteration_bounds = array<i64: 1, 1, 1>, scalar_prefetch = 0 : i64, scratch_operands = 0 : i64, tpu.core_type = #tpu.core_type<tc>, window_params = [{transform_indices = @transform_0, window_bounds = array<i64: 16, 1024>}, {transform_indices = @transform_1, window_bounds = array<i64: 1024, 128>}, {transform_indices = @transform_2, window_bounds = array<i64: 1, 128>}, {transform_indices = @transform_3, window_bounds = array<i64: 16, 128>}]} {
    %c0 = arith.constant 0 : index
    %c0_0 = arith.constant 0 : index
    %0 = vector.load %arg3[%c0, %c0_0] : memref<16x1024xbf16, #tpu.memory_space<vmem>>, vector<16x1024xbf16>
    %c0_1 = arith.constant 0 : index
    %c0_2 = arith.constant 0 : index
    %1 = vector.load %arg4[%c0_1, %c0_2] : memref<1024x128xbf16, #tpu.memory_space<vmem>>, vector<1024x128xbf16>
    %cst = arith.constant dense<0.000000e+00> : vector<16x128xf32>
    %2 = tpu.matmul %0, %1, %cst {dimension_numbers = #tpu.dot_dimension_numbers<[1], [0], [0], [1], [0, 0, 1, 1], [], []>} : vector<16x1024xbf16>, vector<1024x128xbf16>, vector<16x128xf32> -> vector<16x128xf32>
    %c0_i32 = arith.constant 0 : i32
    %3 = arith.cmpi eq, %arg2, %c0_i32 : i32
    %4 = arith.extui %3 : i1 to i32
    %c0_i32_3 = arith.constant 0 : i32
    %5 = arith.cmpi ne, %4, %c0_i32_3 : i32
    scf.if %5 {
      %c0_6 = arith.constant 0 : index
      %c0_7 = arith.constant 0 : index
      %9 = vector.load %arg5[%c0_6, %c0_7] : memref<1x128xf32, #tpu.memory_space<vmem>>, vector<1x128xf32>
      %10 = vector.broadcast %9 : vector<1x128xf32> to vector<16x128xf32>
      %11 = arith.addf %2, %10 : vector<16x128xf32>
      %c0_8 = arith.constant 0 : index
      %c0_9 = arith.constant 0 : index
      %12 = vector.load %arg6[%c0_8, %c0_9] : memref<16x128xf32, #tpu.memory_space<vmem>>, vector<16x128xf32>
      tpu.vector_store %arg6[%c0_8, %c0_9], %11 {strides = array<i32>} : memref<16x128xf32, #tpu.memory_space<vmem>>, vector<16x128xf32>,
    } else {
    }
    %c0_i32_4 = arith.constant 0 : i32
    %6 = arith.cmpi sgt, %arg2, %c0_i32_4 : i32
    %7 = arith.extui %6 : i1 to i32
    %c0_i32_5 = arith.constant 0 : i32
    %8 = arith.cmpi ne, %7, %c0_i32_5 : i32
    scf.if %8 {
      %c0_6 = arith.constant 0 : index
      %c0_7 = arith.constant 0 : index
      %9 = vector.load %arg6[%c0_6, %c0_7] : memref<16x128xf32, #tpu.memory_space<vmem>>, vector<16x128xf32>
      %10 = arith.addf %9, %2 : vector<16x128xf32>
      %c0_8 = arith.constant 0 : index
      %c0_9 = arith.constant 0 : index
      %11 = vector.load %arg6[%c0_8, %c0_9] : memref<16x128xf32, #tpu.memory_space<vmem>>, vector<16x128xf32>
      tpu.vector_store %arg6[%c0_8, %c0_9], %10 {strides = array<i32>} : memref<16x128xf32, #tpu.memory_space<vmem>>, vector<16x128xf32>,
    } else {
    }
    return
  }
  func.func @transform_0(%arg0: i32, %arg1: i32, %arg2: i32) -> (i32, i32) {
    %c0_i32 = arith.constant 0 : i32
    return %arg0, %arg2 : i32, i32
  }
  func.func @transform_1(%arg0: i32, %arg1: i32, %arg2: i32) -> (i32, i32) {
    %c0_i32 = arith.constant 0 : i32
    return %arg2, %arg1 : i32, i32
  }
  func.func @transform_2(%arg0: i32, %arg1: i32, %arg2: i32) -> (i32, i32) {
    %c0_i32 = arith.constant 0 : i32
    %c0_i32_0 = arith.constant 0 : i32
    return %c0_i32, %arg1 : i32, i32
  }
  func.func @transform_3(%arg0: i32, %arg1: i32, %arg2: i32) -> (i32, i32) {
    %c0_i32 = arith.constant 0 : i32
    return %arg0, %arg1 : i32, i32
  }
}

</mosaic_0001>

<bundles_post_ra>
// kernel: classifier_forward.1
= control target key start
LH: loop header
LB: loop body
LE: loop exit
PB: predicated region body
PF: predicated region fallthrough
CT: control target
= control target key end

     0   :  { %8 = vsyncpa [#allocation3], 0  ;;  %s1119_s15 = smov [#allocation2]   ;;  %s1120_s17 = smov 64   ;;  %s1202_s0 = inlined_call_operand.vmem [shape: bf16[16,1024], index: 0, kind: input, shape index: {}]   ;;  %s1203_s1 = inlined_call_operand.hbm [shape: bf16[1024,128], index: 1, kind: input, shape index: {}]   ;;  %s1204_s2 = inlined_call_operand.vmem [shape: f32[1,128], index: 2, kind: input, shape index: {}]   ;;  %s1205_s3 = inlined_call_operand.vmem [shape: f32[16,128], index: 3, kind: output, shape index: {}]  }
   0x1   :  { %s15_s14 = sshll.u32 %s1203_s1, 4  ;;  %s17_s16 = sshll.u32 %s1119_s15, 4  ;;  %s16_s14 = int_to_ptr.hbm [resolvable:$true] %s15_s14  ;;  %s18_s16 = int_to_ptr.vmem [resolvable:$true] %s17_s16 }
   0x2   :  { %s1121_s18 = smov 4  }
   0x3   :  { %23 = dma.hbm_to_vmem [thread:$0]  %s16_s14, 8192, %s18_s16, [#allocation3], %s1120_s17, %s1120_s17, %s1121_s18  }
   0x4   :  { %1117 = dma.done.wait [#allocation3], 8192  }
   0x5   :  { %1118 = vsyncadd [#allocation3], 4294959104  ;;  %v1032_v0 = vld [vmem:[#allocation2 + $0x38] sm:$0xff]  ;;  %v1031_v4 = vld [vmem:[#allocation2 + $0x30] sm:$0xff] }
   0x6   :  { %v1040_v1 = vld [vmem:[#allocation2 + $0x78] sm:$0xff]  ;;  %590 = vmatpush.bf16.msra.mxu0 %v1032_v0  ;;  %v1039_v5 = vld [vmem:[#allocation2 + $0x70] sm:$0xff]  ;;  %v1030_v8 = vld [vmem:[#allocation2 + $0x28] sm:$0xff] }
   0x7   :  { %v1048_v2 = vld [vmem:[#allocation2 + $0xb8] sm:$0xff]  ;;  %604 = vmatpush.bf16.msra.mxu1 %v1040_v1  ;;  %v1047_v6 = vld [vmem:[#allocation2 + $0xb0] sm:$0xff]  ;;  %v1038_v9 = vld [vmem:[#allocation2 + $0x68] sm:$0xff] }
   0x8   :  { %v1056_v3 = vld [vmem:[#allocation2 + $0xf8] sm:$0xff]  ;;  %618 = vmatpush.bf16.msra.mxu2 %v1048_v2  ;;  %v1055_v7 = vld [vmem:[#allocation2 + $0xf0] sm:$0xff]  ;;  %v1046_v10 = vld [vmem:[#allocation2 + $0xa8] sm:$0xff] }
   0x9   :  { %632 = vmatpush.bf16.msra.mxu3 %v1056_v3  ;;  %v1054_v11 = vld [vmem:[#allocation2 + $0xe8] sm:$0xff]  ;;  %v1029_v12 = vld [vmem:[#allocation2 + $0x20] sm:$0xff]  ;;  %v1028_v16 = vld [vmem:[#allocation2 + $0x18] sm:$0xff] }
   0xa   :  { %591 = vmatpush.bf16.msra.mxu0 %v1031_v4  ;;  %v1037_v13 = vld [vmem:[#allocation2 + $0x60] sm:$0xff]  ;;  %v1036_v17 = vld [vmem:[#allocation2 + $0x58] sm:$0xff]  ;;  %v1027_v20 = vld [vmem:[#allocation2 + $0x10] sm:$0xff] }
   0xb   :  { %605 = vmatpush.bf16.msra.mxu1 %v1039_v5  ;;  %v1045_v14 = vld [vmem:[#allocation2 + $0xa0] sm:$0xff]  ;;  %v1044_v18 = vld [vmem:[#allocation2 + $0x98] sm:$0xff]  ;;  %v1035_v21 = vld [vmem:[#allocation2 + $0x50] sm:$0xff] }
   0xc   :  { %619 = vmatpush.bf16.msra.mxu2 %v1047_v6  ;;  %v1053_v15 = vld [vmem:[#allocation2 + $0xe0] sm:$0xff]  ;;  %v1052_v19 = vld [vmem:[#allocation2 + $0xd8] sm:$0xff]  ;;  %v1043_v22 = vld [vmem:[#allocation2 + $0x90] sm:$0xff] }
   0xd   :  { %633 = vmatpush.bf16.msra.mxu3 %v1055_v7  ;;  %v1051_v23 = vld [vmem:[#allocation2 + $0xd0] sm:$0xff]  ;;  %v1026_v24 = vld [vmem:[#allocation2 + $0x8] sm:$0xff]  ;;  %v1025_v28 = vld [vmem:[#allocation2] sm:$0xff] }
   0xe   :  { %592 = vmatpush.bf16.msra.mxu0 %v1030_v8  ;;  %v1034_v25 = vld [vmem:[#allocation2 + $0x48] sm:$0xff]  ;;  %v1033_v29 = vld [vmem:[#allocation2 + $0x40] sm:$0xff]  ;;  %v1064_v32 = vld [vmem:[#allocation2 + $0x138] sm:$0xff] }
   0xf   :  { %606 = vmatpush.bf16.msra.mxu1 %v1038_v9  ;;  %v1042_v26 = vld [vmem:[#allocation2 + $0x88] sm:$0xff]  ;;  %v1041_v30 = vld [vmem:[#allocation2 + $0x80] sm:$0xff]  ;;  %v1072_v33 = vld [vmem:[#allocation2 + $0x178] sm:$0xff] }
  0x10   :  { %620 = vmatpush.bf16.msra.mxu2 %v1046_v10  ;;  %v1050_v27 = vld [vmem:[#allocation2 + $0xc8] sm:$0xff]  ;;  %v1049_v31 = vld [vmem:[#allocation2 + $0xc0] sm:$0xff]  ;;  %v1080_v42 = vld [vmem:[#allocation2 + $0x1b8] sm:$0xff] }
  0x11   :  { %634 = vmatpush.bf16.msra.mxu3 %v1054_v11  ;;  %v739_v34 = vld [vmem:[%s1202_s0 + $0x8] sm:$0xf]  ;;  %v1018_v36 = vld [vmem:[%s1202_s0 + $0xc] sm:$0xf]  ;;  %v731_v38 = vld [vmem:[%s1202_s0] sm:$0xf] }
  0x12   :  { %593 = vmatpush.bf16.msra.mxu0 %v1029_v12  ;;  %v1022_v35 = vld [vmem:[%s1202_s0 + $0x24] sm:$0xf0]  ;;  %v741_v37 = vld [vmem:[%s1202_s0 + $0x28] sm:$0xf0]  ;;  %v1021_v39 = vld [vmem:[%s1202_s0 + $0x1c] sm:$0xf0] }
  0x13   :  { %607 = vmatpush.bf16.msra.mxu1 %v1037_v13  ;;  %v1017_v40 = vld [vmem:[%s1202_s0 + $0x4] sm:$0xf]  ;;  %v1088_v43 = vld [vmem:[#allocation2 + $0x1f8] sm:$0xff]  ;;  %v740_v44 = vor.u32 %v1022_v35, %v739_v34  ;;  %v744_v45 = vor.u32 %v1018_v36, %v741_v37  ;;  %v732_v46 = vor.u32 %v1021_v39, %v731_v38  ;;  %v1063_v48 = vld [vmem:[#allocation2 + $0x130] sm:$0xff] }
  0x14   :  { %621 = vmatpush.bf16.msra.mxu2 %v1045_v14  ;;  %v733_v41 = vld [vmem:[%s1202_s0 + $0x20] sm:$0xf0]  ;;  %v1071_v49 = vld [vmem:[#allocation2 + $0x170] sm:$0xff]  ;;  %v1062_v52 = vld [vmem:[#allocation2 + $0x128] sm:$0xff] }
  0x15   :  { %635 = vmatpush.bf16.msra.mxu3 %v1053_v15  ;;  %v736_v47 = vor.u32 %v1017_v40, %v733_v41  ;;  %v1079_v50 = vld [vmem:[#allocation2 + $0x1b0] sm:$0xff]  ;;  %v1070_v53 = vld [vmem:[#allocation2 + $0x168] sm:$0xff]  ;;  %v1061_v56 = vld [vmem:[#allocation2 + $0x120] sm:$0xff] }
  0x16   :  { %594 = vmatpush.bf16.msra.mxu0 %v1028_v16  ;;  %v1087_v51 = vld [vmem:[#allocation2 + $0x1f0] sm:$0xff]  ;;  %v1078_v54 = vld [vmem:[#allocation2 + $0x1a8] sm:$0xff]  ;;  %v1069_v57 = vld [vmem:[#allocation2 + $0x160] sm:$0xff] }
  0x17   :  { %608 = vmatpush.bf16.msra.mxu1 %v1036_v17  ;;  %v1086_v55 = vld [vmem:[#allocation2 + $0x1e8] sm:$0xff]  ;;  %v1077_v58 = vld [vmem:[#allocation2 + $0x1a0] sm:$0xff]  ;;  %v1060_v60 = vld [vmem:[#allocation2 + $0x118] sm:$0xff] }
  0x18   :  { %622 = vmatpush.bf16.msra.mxu2 %v1044_v18  ;;  %v1085_v59 = vld [vmem:[#allocation2 + $0x1e0] sm:$0xff]  ;;  %v1068_v61 = vld [vmem:[#allocation2 + $0x158] sm:$0xff]  ;;  %v1059_v0 = vld [vmem:[#allocation2 + $0x110] sm:$0xff] }
  0x19   :  { %636 = vmatpush.bf16.msra.mxu3 %v1052_v19  ;;  %v1076_v62 = vld [vmem:[#allocation2 + $0x198] sm:$0xff]  ;;  %v1067_v1 = vld [vmem:[#allocation2 + $0x150] sm:$0xff]  ;;  %v1058_v4 = vld [vmem:[#allocation2 + $0x108] sm:$0xff] }
  0x1a   :  { %595 = vmatpush.bf16.msra.mxu0 %v1027_v20  ;;  %v1084_v63 = vld [vmem:[#allocation2 + $0x1d8] sm:$0xff]  ;;  %v1075_v2 = vld [vmem:[#allocation2 + $0x190] sm:$0xff]  ;;  %v1066_v5 = vld [vmem:[#allocation2 + $0x148] sm:$0xff] }
  0x1b   :  { %609 = vmatpush.bf16.msra.mxu1 %v1035_v21  ;;  %v1083_v3 = vld [vmem:[#allocation2 + $0x1d0] sm:$0xff]  ;;  %v1074_v6 = vld [vmem:[#allocation2 + $0x188] sm:$0xff]  ;;  %v1057_v8 = vld [vmem:[#allocation2 + $0x100] sm:$0xff] }
  0x1c   :  { %623 = vmatpush.bf16.msra.mxu2 %v1043_v22  ;;  %v1082_v7 = vld [vmem:[#allocation2 + $0x1c8] sm:$0xff]  ;;  %v1065_v9 = vld [vmem:[#allocation2 + $0x140] sm:$0xff]  ;;  %v747_v12 = vld [vmem:[%s1202_s0 + $0x10] sm:$0xf] }
  0x1d   :  { %637 = vmatpush.bf16.msra.mxu3 %v1051_v23  ;;  %v1073_v10 = vld [vmem:[#allocation2 + $0x180] sm:$0xff]  ;;  %v1023_v13 = vld [vmem:[%s1202_s0 + $0x2c] sm:$0xf0]  ;;  %v1019_v14 = vld [vmem:[%s1202_s0 + $0x14] sm:$0xf] }
  0x1e   :  { %596 = vmatpush.bf16.msra.mxu0 %v1026_v24  ;;  %v1081_v11 = vld [vmem:[#allocation2 + $0x1c0] sm:$0xff]  ;;  %v749_v15 = vld [vmem:[%s1202_s0 + $0x30] sm:$0xf0]  ;;  %v755_v16 = vld [vmem:[%s1202_s0 + $0x18] sm:$0xf]  ;;  %v748_v20 = vor.u32 %v1023_v13, %v747_v12 }
  0x1f   :  { %610 = vmatpush.bf16.msra.mxu1 %v1034_v25  ;;  %v1024_v17 = vld [vmem:[%s1202_s0 + $0x34] sm:$0xf0]  ;;  %v1020_v18 = vld [vmem:[%s1202_s0 + $0x1c] sm:$0xf]  ;;  %v752_v21 = vor.u32 %v1019_v14, %v749_v15 }
  0x20   :  { %624 = vmatpush.bf16.msra.mxu2 %v1042_v26  ;;  %v757_v19 = vld [vmem:[%s1202_s0 + $0x38] sm:$0xf0]  ;;  %v756_v22 = vor.u32 %v1024_v17, %v755_v16 }
  0x21   :  { %638 = vmatpush.bf16.msra.mxu3 %v1050_v27  ;;  %v760_v23 = vor.u32 %v1020_v18, %v757_v19 }
  0x22   :  { %597 = vmatpush.bf16.msra.mxu0 %v1025_v28 }
  0x23   :  { %611 = vmatpush.bf16.msra.mxu1 %v1033_v29 }
  0x24   :  { %625 = vmatpush.bf16.msra.mxu2 %v1041_v30 }
  0x25   :  { %639 = vmatpush.bf16.msra.mxu3 %v1049_v31  ;;  %598 = vmatmul.bf16.vlgmr.msra.gmra.mxu0 %v732_v46 }
  0x26   :  { %646 = vmatpush.bf16.msrb.mxu0 %v1064_v32  ;;  %612 = vmatmul.bf16.vlgmr.msra.gmra.mxu1 %v736_v47 }
  0x27   :  { %660 = vmatpush.bf16.msrb.mxu1 %v1072_v33  ;;  %626 = vmatmul.bf16.vlgmr.msra.gmra.mxu2 %v740_v44 }
  0x28   :  { %674 = vmatpush.bf16.msrb.mxu2 %v1080_v42  ;;  %640 = vmatmul.bf16.vlgmr.msra.gmra.mxu3 %v744_v45  ;;  %v1092_v45 = vld [vmem:[%s1204_s2] ss:$0 sm:$0xff] }
  0x29   :  { %688 = vmatpush.bf16.msrb.mxu3 %v1088_v43 }
  0x2a   :  { %647 = vmatpush.bf16.msrb.mxu0 %v1063_v48 }
  0x2b   :  { %661 = vmatpush.bf16.msrb.mxu1 %v1071_v49 }
  0x2c   :  { %675 = vmatpush.bf16.msrb.mxu2 %v1079_v50 }
  0x2d   :  { %689 = vmatpush.bf16.msrb.mxu3 %v1087_v51 }
  0x2e   :  { %648 = vmatpush.bf16.msrb.mxu0 %v1062_v52 }
  0x2f   :  { %662 = vmatpush.bf16.msrb.mxu1 %v1070_v53 }
  0x30   :  { %676 = vmatpush.bf16.msrb.mxu2 %v1078_v54 }
  0x31   :  { %690 = vmatpush.bf16.msrb.mxu3 %v1086_v55 }
  0x32   :  { %649 = vmatpush.bf16.msrb.mxu0 %v1061_v56 }
  0x33   :  { %663 = vmatpush.bf16.msrb.mxu1 %v1069_v57 }
  0x34   :  { %677 = vmatpush.bf16.msrb.mxu2 %v1077_v58 }
  0x35   :  { %691 = vmatpush.bf16.msrb.mxu3 %v1085_v59 }
  0x36   :  { %650 = vmatpush.bf16.msrb.mxu0 %v1060_v60 }
  0x37   :  { %664 = vmatpush.bf16.msrb.mxu1 %v1068_v61 }
  0x38   :  { %678 = vmatpush.bf16.msrb.mxu2 %v1076_v62 }
  0x39   :  { %692 = vmatpush.bf16.msrb.mxu3 %v1084_v63 }
  0x3a   :  { %651 = vmatpush.bf16.msrb.mxu0 %v1059_v0 }
  0x3b   :  { %665 = vmatpush.bf16.msrb.mxu1 %v1067_v1 }
  0x3c   :  { %679 = vmatpush.bf16.msrb.mxu2 %v1075_v2 }
  0x3d   :  { %693 = vmatpush.bf16.msrb.mxu3 %v1083_v3 }
  0x3e   :  { %652 = vmatpush.bf16.msrb.mxu0 %v1058_v4 }
  0x3f   :  { %666 = vmatpush.bf16.msrb.mxu1 %v1066_v5 }
  0x40   :  { %680 = vmatpush.bf16.msrb.mxu2 %v1074_v6 }
  0x41   :  { %694 = vmatpush.bf16.msrb.mxu3 %v1082_v7 }
  0x42   :  { %653 = vmatpush.bf16.msrb.mxu0 %v1057_v8 }
  0x43   :  { %667 = vmatpush.bf16.msrb.mxu1 %v1065_v9 }
  0x44   :  { %681 = vmatpush.bf16.msrb.mxu2 %v1073_v10 }
  0x45   :  { %695 = vmatpush.bf16.msrb.mxu3 %v1081_v11  ;;  %654 = vmatmul.bf16.vlgmr.msrb.gmra.mxu0 %v748_v20 }
  0x46   :  { %668 = vmatmul.bf16.vlgmr.msrb.gmra.mxu1 %v752_v21 }
  0x47   :  { %682 = vmatmul.bf16.vlgmr.msrb.gmra.mxu2 %v756_v22 }
  0x48   :  { %696 = vmatmul.bf16.vlgmr.msrb.gmra.mxu3 %v760_v23 }
  0xa2   :  { %v599_v24 = vpop.f32.mrf.mxu0 }
  0xa3   :  { %v613_v25 = vpop.f32.mrf.mxu1 }
  0xa4   :  { %v614_v28 = vadd.f32 %v613_v25, %v599_v24 }
  0xaa   :  { %v627_v26 = vpop.f32.mrf.mxu2  ;;  %v601_v29 = vpop.f32.mrf.mxu0 }
  0xab   :  { %v641_v27 = vpop.f32.mrf.mxu3  ;;  %v615_v30 = vpop.f32.mrf.mxu1  ;;  %v628_v31 = vadd.f32 %v627_v26, %v614_v28 }
  0xac   :  { %v616_v35 = vadd.f32 %v615_v30, %v601_v29 }
  0xad   :  { %v642_v34 = vadd.f32 %v641_v27, %v628_v31 }
  0xb2   :  { %v629_v32 = vpop.f32.mrf.mxu2 }
  0xb3   :  { %v643_v33 = vpop.f32.mrf.mxu3  ;;  %v630_v39 = vadd.f32 %v629_v32, %v616_v35 }
  0xb5   :  { %v644_v43 = vadd.f32 %v643_v33, %v630_v39 }
  0xc2   :  { %v655_v36 = vpop.f32.mrf.mxu0 }
  0xc3   :  { %v656_v37 = vadd.f32 %v655_v36, %v642_v34  ;;  %v669_v38 = vpop.f32.mrf.mxu1 }
  0xc5   :  { %v670_v40 = vadd.f32 %v669_v38, %v656_v37 }
  0xca   :  { %v683_v41 = vpop.f32.mrf.mxu2  ;;  %v657_v46 = vpop.f32.mrf.mxu0 }
  0xcb   :  { %v697_v42 = vpop.f32.mrf.mxu3  ;;  %v684_v44 = vadd.f32 %v683_v41, %v670_v40  ;;  %v658_v48 = vadd.f32 %v657_v46, %v644_v43  ;;  %v671_v50 = vpop.f32.mrf.mxu1 }
  0xcd   :  { %v698_v47 = vadd.f32 %v697_v42, %v684_v44  ;;  %v672_v51 = vadd.f32 %v671_v50, %v658_v48 }
  0xcf   :  { %v710_v49 = vadd.f32 %v1092_v45, %v698_v47 }
  0xd1   :  { %712 = vst [vmem:[%s1205_s3] sm:$0xff] %v710_v49 }
  0xd2   :  { %v685_v52 = vpop.f32.mrf.mxu2 }
  0xd3   :  { %v686_v53 = vadd.f32 %v685_v52, %v672_v51  ;;  %v699_v54 = vpop.f32.mrf.mxu3 }
  0xd5   :  { %v700_v55 = vadd.f32 %v699_v54, %v686_v53 }
  0xd7   :  { %v711_v56 = vadd.f32 %v1092_v45, %v700_v55 }
  0xd9   :  { %713 = vst [vmem:[%s1205_s3 + $0x8] sm:$0xff] %v711_v56 }
  0xda   :  { %728 = vsyncpa [#allocation3], 1 }

</bundles_post_ra>
